<compile_context>
chip_gen: v7x
topology: tpu7x:2x2x1
jax: 0.10.0
libtpu: 0.0.40
codegen_flags: <defaults>
</compile_context>

<pallas_src>
import jax
import jax.numpy as jnp
from jax.experimental import pallas as pl
from jax.experimental.pallas import tpu as pltpu


D_PAD = 128  # lane-dense padded feature width for intermediate activations


def _round_up(n, m):
    return ((n + m - 1) // m) * m


def make_mimo_mlp_kernel(num_layers, d_in0, d_out, d_pad):
    """Fused MLP kernel: x @ W1 + b1 -> ReLU -> ... -> x @ Wn + bn."""

    def kernel(x_ref, w_ref, b_ref, o_ref):
        # x arrives un-padded f32; cast to bf16 in-register (MXU-native).
        h = x_ref[...].astype(jnp.bfloat16)                 # (tb, d_in0)
        for l in range(num_layers):                         # static unroll
            k = d_in0 if l == 0 else d_pad                  # real K only for layer 0
            w_l = w_ref[l * d_pad:l * d_pad + k, :]         # (k, d_pad)  bf16
            b_l = b_ref[:, l * d_pad:(l + 1) * d_pad]       # (1, d_pad)  f32
            h = jnp.dot(h, w_l, preferred_element_type=jnp.float32) + b_l
            if l < num_layers - 1:
                h = jnp.maximum(h, 0.0).astype(jnp.bfloat16)
        # Only the real output columns go back to HBM.
        o_ref[...] = h[:, :d_out].astype(o_ref.dtype)

    return kernel


def mimo_mlp_forward(x, layer_params, *, block_batch=4096):
    """Fused MLP forward.

    x:            (B, D0) float32
    layer_params: list of (w, b) with w shaped (in_features, out_features)
                  (i.e. PyTorch weight.T) and b shaped (out_features,).
                  All in/out feature dims must be <= 128.
    Numerics: bf16 operands with f32 accumulation (documented, not f32-exact).
    """
    B, d0 = x.shape
    num_layers = len(layer_params)
    d_out = layer_params[-1][0].shape[1]
    assert layer_params[0][0].shape[0] == d0

    # ---- pack weights/biases lane-dense (zero-padded to 128 cols/rows) ----
    w_packed = jnp.zeros((num_layers * D_PAD, D_PAD), jnp.bfloat16)
    b_packed = jnp.zeros((1, num_layers * D_PAD), jnp.float32)
    for l, (w, b) in enumerate(layer_params):
        din, dout = w.shape
        assert din <= D_PAD and dout <= D_PAD
        w_packed = w_packed.at[l * D_PAD:l * D_PAD + din, :dout].set(
            w.astype(jnp.bfloat16))
        b_packed = b_packed.at[:, l * D_PAD:l * D_PAD + dout].set(
            b.reshape(1, -1).astype(jnp.float32))

    # ---- batch tile: multiple of 16, capped so the grid has >=2 steps -----
    half = _round_up(max(pl.cdiv(B, 2), 8), 16)
    tb = min(_round_up(block_batch, 16), half)
    grid = (pl.cdiv(B, tb),)   # partial last block handles the batch tail

    kernel = make_mimo_mlp_kernel(num_layers, d0, d_out, D_PAD)

    out = pl.pallas_call(
        kernel,
        out_shape=jax.ShapeDtypeStruct((B, d_out), jnp.float32),
        grid_spec=pl.GridSpec(
            grid=grid,
            in_specs=[
                # batch-tiled, un-padded activations (last dim = full extent)
                pl.BlockSpec((tb, d0), lambda i: (i, 0)),
                # weights / biases: constant index_map -> VMEM-resident
                pl.BlockSpec((num_layers * D_PAD, D_PAD), lambda i: (0, 0)),
                pl.BlockSpec((1, num_layers * D_PAD), lambda i: (0, 0)),
            ],
            out_specs=pl.BlockSpec((tb, d_out), lambda i: (i, 0)),
        ),
        compiler_params=pltpu.CompilerParams(
            dimension_semantics=("parallel",),   # megacore sharding on v7x
        ),
    )(x, w_packed, b_packed)

    return out


def init_params(key, dims=(32, 64, 64, 16)):
    """nn.Linear-style init (uniform +-1/sqrt(fan_in)); weights stored (in, out)."""
    layers = []
    ks = jax.random.split(key, 2 * (len(dims) - 1))
    for l in range(len(dims) - 1):
        fan_in, fan_out = dims[l], dims[l + 1]
        bound = 1.0 / jnp.sqrt(fan_in)
        w = jax.random.uniform(ks[2 * l], (fan_in, fan_out), jnp.float32,
                               -bound, bound)
        b = jax.random.uniform(ks[2 * l + 1], (fan_out,), jnp.float32,
                               -bound, bound)
        layers.append((w, b))
    return layers


def reference_forward_f32(x, layer_params):
    """Pure f32 reference matching the PyTorch Sequential forward."""
    h = x
    for l, (w, b) in enumerate(layer_params):
        h = h @ w + b
        if l < len(layer_params) - 1:
            h = jnp.maximum(h, 0.0)
    return h


def reference_forward_bf16(x, layer_params):
    """Same math with bf16 operands / f32 accumulation (kernel's numerics)."""
    h = x.astype(jnp.bfloat16)
    for l, (w, b) in enumerate(layer_params):
        h = jnp.dot(h, w.astype(jnp.bfloat16),
                    preferred_element_type=jnp.float32) + b
        if l < len(layer_params) - 1:
            h = jnp.maximum(h, 0.0).astype(jnp.bfloat16)
    return h


if __name__ == "__main__":
    key = jax.random.PRNGKey(0)
    k_x, k_p = jax.random.split(key)

    B, D0 = 200, 32                       # non-multiple-of-tile batch
    x = jax.random.normal(k_x, (B, D0), dtype=jnp.float32)
    params = init_params(k_p, dims=(D0, 64, 64, 16))

    # Default block_batch caps tb at ~B/2 -> 2 grid steps + a partial tail,
    # exercising pipelining, both-TC sharding, and boundary-block masking.
    out = mimo_mlp_forward(x, params)
    out = jax.block_until_ready(out)
    assert out.shape == (B, 16), out.shape

    ref_bf16 = reference_forward_bf16(x, params)
    ref_f32 = reference_forward_f32(x, params)
    assert bool(jnp.allclose(out, ref_bf16, atol=2e-2, rtol=2e-2)), \
        "mismatch vs bf16 reference"
    assert bool(jnp.allclose(out, ref_f32, atol=1e-1, rtol=1e-1)), \
        "mismatch vs f32 reference"

    print("KERNEL_OK")
</pallas_src>

<mosaic_0001>
module attributes {stable_mosaic.version = 11 : i64} {
  func.func @kernel(%arg0: i32, %arg1: memref<112x32xf32, #tpu.memory_space<vmem>>, %arg2: memref<384x128xbf16, #tpu.memory_space<vmem>>, %arg3: memref<1x384xf32, #tpu.memory_space<vmem>>, %arg4: memref<112x16xf32, #tpu.memory_space<vmem>>) attributes {dimension_semantics = [#tpu.dimension_semantics<parallel>], iteration_bounds = array<i64: 2>, scalar_prefetch = 0 : i64, scratch_operands = 0 : i64, tpu.core_type = #tpu.core_type<tc>, window_params = [{transform_indices = @transform_0, window_bounds = array<i64: 112, 32>}, {pipeline_mode = #tpu.pipeline_mode<synchronous>, transform_indices = @transform_1, window_bounds = array<i64: 384, 128>}, {pipeline_mode = #tpu.pipeline_mode<synchronous>, transform_indices = @transform_2, window_bounds = array<i64: 1, 384>}, {transform_indices = @transform_3, window_bounds = array<i64: 112, 16>}]} {
    %c0 = arith.constant 0 : index
    %c0_0 = arith.constant 0 : index
    %0 = vector.load %arg1[%c0, %c0_0] : memref<112x32xf32, #tpu.memory_space<vmem>>, vector<112x32xf32>
    %1 = arith.truncf %0 : vector<112x32xf32> to vector<112x32xbf16>
    %c0_1 = arith.constant 0 : index
    %c0_2 = arith.constant 0 : index
    %2 = vector.load %arg2[%c0_1, %c0_2] : memref<384x128xbf16, #tpu.memory_space<vmem>>, vector<32x128xbf16>
    %c0_3 = arith.constant 0 : index
    %c0_4 = arith.constant 0 : index
    %3 = vector.load %arg3[%c0_3, %c0_4] : memref<1x384xf32, #tpu.memory_space<vmem>>, vector<1x128xf32>
    %cst = arith.constant dense<0.000000e+00> : vector<112x128xf32>
    %4 = tpu.matmul %1, %2, %cst {dimension_numbers = #tpu.dot_dimension_numbers<[1], [0], [0], [1], [0, 0, 1, 1], [], []>} : vector<112x32xbf16>, vector<32x128xbf16>, vector<112x128xf32> -> vector<112x128xf32>
    %5 = vector.broadcast %3 : vector<1x128xf32> to vector<112x128xf32>
    %6 = arith.addf %4, %5 : vector<112x128xf32>
    %cst_5 = arith.constant 0.000000e+00 : f32
    %7 = vector.broadcast %cst_5 : f32 to vector<112x128xf32>
    %8 = arith.maximumf %6, %7 : vector<112x128xf32>
    %9 = arith.truncf %8 : vector<112x128xf32> to vector<112x128xbf16>
    %c128 = arith.constant 128 : index
    %c0_6 = arith.constant 0 : index
    %10 = vector.load %arg2[%c128, %c0_6] : memref<384x128xbf16, #tpu.memory_space<vmem>>, vector<128x128xbf16>
    %c0_7 = arith.constant 0 : index
    %c128_8 = arith.constant 128 : index
    %11 = vector.load %arg3[%c0_7, %c128_8] : memref<1x384xf32, #tpu.memory_space<vmem>>, vector<1x128xf32>
    %cst_9 = arith.constant dense<0.000000e+00> : vector<112x128xf32>
    %12 = tpu.matmul %9, %10, %cst_9 {dimension_numbers = #tpu.dot_dimension_numbers<[1], [0], [0], [1], [0, 0, 1, 1], [], []>} : vector<112x128xbf16>, vector<128x128xbf16>, vector<112x128xf32> -> vector<112x128xf32>
    %13 = vector.broadcast %11 : vector<1x128xf32> to vector<112x128xf32>
    %14 = arith.addf %12, %13 : vector<112x128xf32>
    %cst_10 = arith.constant 0.000000e+00 : f32
    %15 = vector.broadcast %cst_10 : f32 to vector<112x128xf32>
    %16 = arith.maximumf %14, %15 : vector<112x128xf32>
    %17 = arith.truncf %16 : vector<112x128xf32> to vector<112x128xbf16>
    %c256 = arith.constant 256 : index
    %c0_11 = arith.constant 0 : index
    %18 = vector.load %arg2[%c256, %c0_11] : memref<384x128xbf16, #tpu.memory_space<vmem>>, vector<128x128xbf16>
    %c0_12 = arith.constant 0 : index
    %c256_13 = arith.constant 256 : index
    %19 = vector.load %arg3[%c0_12, %c256_13] : memref<1x384xf32, #tpu.memory_space<vmem>>, vector<1x128xf32>
    %cst_14 = arith.constant dense<0.000000e+00> : vector<112x128xf32>
    %20 = tpu.matmul %17, %18, %cst_14 {dimension_numbers = #tpu.dot_dimension_numbers<[1], [0], [0], [1], [0, 0, 1, 1], [], []>} : vector<112x128xbf16>, vector<128x128xbf16>, vector<112x128xf32> -> vector<112x128xf32>
    %21 = vector.broadcast %19 : vector<1x128xf32> to vector<112x128xf32>
    %22 = arith.addf %20, %21 : vector<112x128xf32>
    %23 = vector.extract_strided_slice %22 {offsets = [0, 0], sizes = [112, 16], strides = [1, 1]} : vector<112x128xf32> to vector<112x16xf32>
    %c0_15 = arith.constant 0 : index
    %c0_16 = arith.constant 0 : index
    %24 = vector.load %arg4[%c0_15, %c0_16] : memref<112x16xf32, #tpu.memory_space<vmem>>, vector<112x16xf32>
    tpu.vector_store %arg4[%c0_15, %c0_16], %23 {strides = array<i32>} : memref<112x16xf32, #tpu.memory_space<vmem>>, vector<112x16xf32>,
    return
  }
  func.func @transform_0(%arg0: i32) -> (i32, i32) {
    %c0_i32 = arith.constant 0 : i32
    %c0_i32_0 = arith.constant 0 : i32
    return %arg0, %c0_i32 : i32, i32
  }
  func.func @transform_1(%arg0: i32) -> (i32, i32) {
    %c0_i32 = arith.constant 0 : i32
    %c0_i32_0 = arith.constant 0 : i32
    %c0_i32_1 = arith.constant 0 : i32
    return %c0_i32, %c0_i32_0 : i32, i32
  }
  func.func @transform_2(%arg0: i32) -> (i32, i32) {
    %c0_i32 = arith.constant 0 : i32
    %c0_i32_0 = arith.constant 0 : i32
    %c0_i32_1 = arith.constant 0 : i32
    return %c0_i32, %c0_i32_0 : i32, i32
  }
  func.func @transform_3(%arg0: i32) -> (i32, i32) {
    %c0_i32 = arith.constant 0 : i32
    %c0_i32_0 = arith.constant 0 : i32
    return %arg0, %c0_i32 : i32, i32
  }
}

</mosaic_0001>

<bundles_post_ra>
// kernel: tpu_custom_call.1
= control target key start
LH: loop header
LB: loop body
LE: loop exit
PB: predicated region body
PF: predicated region fallthrough
CT: control target
= control target key end

     0   :  { %s1427_s12 = smov 0   ;;  %s1429_s13 = smov 0   ;;  %s1766_s0 = inlined_call_operand.vmem [shape: f32[200,32], index: 0, kind: input, shape index: {}]   ;;  %s1767_s1 = inlined_call_operand.vmem [shape: bf16[384,128], index: 1, kind: input, shape index: {}]   ;;  %s1768_s2 = inlined_call_operand.vmem [shape: f32[1,384], index: 2, kind: input, shape index: {}]   ;;  %s1769_s3 = inlined_call_operand.vmem [shape: f32[200,16], index: 3, kind: output, shape index: {}]  }
   0x1   :  { %s1431_s14 = smov 0  }
   0x2 LB: > { %s1440_s15 = sadd.s32 4294967295, %s1371_s14   ;;  %s1442_s16 = sadd.s32 1, %s1371_s14   ;;  %s1371_s14 = sphi %s1431_s14, %s1776_s14   ;;  %s1367_s13 = sphi %s1429_s13, %s1775_s13   ;;  %s1363_s12 = sphi %s1427_s12, %s1774_s12  }
   0x3   : > { %s85_s17 = ssub.s32 %s1371_s14, %s1442_s16  ;;  %s88_s18 = sadd.s32 1, %s1367_s13 }
   0x4   : > { %p86_p0 = scmp.eq.s32.totalorder %s85_s17, 0  ;;  %p98_p1 = scmp.ne.s32.totalorder %s1367_s13, %s1363_s12 }
   0x5   : > { %p99_p2 = scmp.eq.s32.totalorder %s1440_s15, 1  ;;  %p997_p3 = scmp.ge.s32.totalorder %s1371_s14, 1 }
   0x6   : > { %s1450_s19 = scalar_select %p86_p0, %s1367_s13, %s88_s18  }
   0x7   : > { %p1452_p4 = por %p99_p2, %p98_p1  ;;  %p146_p5 = scmp.lt.s32.totalorder %s1371_s14, 3 }
   0x9   : > { %p147_p6 = pnand %p997_p3, %p146_p5 }
   0xa   : > { %v1295_v0 = vld [vmem:[%s1767_s1] sm:$0xff] (!%p147_p6)   ;;  %v1405_v1 = vmov (!%p147_p6), 0.0   ;;  %v1296_v2 = vld [vmem:[%s1767_s1 + $0x8] sm:$0xff] (!%p147_p6)   ;;  %vm1406_vm0 = vmmov (!%p147_p6), 0   ;;  %s1467_s25 = smul.u32 (!%p147_p6), 14, %s1440_s15  ;;  %vm237_vm1 = vcmask (!%p147_p6), 261120  }
   0xb   : > { %150 = sbr.rel (%p147_p6) target bundleno = 791 (0x317), region = 32  ;;  %1079 = vmatprep.subr.bf16.mxu0 (!%p147_p6), %v1405_v1  ;;  %1199 = vmatprep.subr.bf16.mxu1 (!%p147_p6), %v1405_v1  ;;  %v1297_v8 = vld [vmem:[%s1767_s1 + $0x40] sm:$0xff] (!%p147_p6)   ;;  %v1298_v14 = vld [vmem:[%s1767_s1 + $0x48] sm:$0xff] (!%p147_p6)   ;;  %v1299_v17 = vld [vmem:[%s1767_s1 + $0x50] sm:$0xff] (!%p147_p6)   ;;  %vm710_vm2 = vcmask (!%p147_p6), 130048  }
   0xc   : > { %1080 = vmatpush3.bf16.msra.mxu0 (!%p147_p6), %v1295_v0  ;;  %1083 = vmatprep.mubr.msk.bf16.mxu0 (!%p147_p6), %vm1406_vm0, %v1405_v1  ;;  %p178_p7 = scmp.lt.s32.totalorder (!%p147_p6), %s1467_s25, 24  ;;  %v1300_v23 = vld [vmem:[%s1767_s1 + $0x58] sm:$0xff] (!%p147_p6)   ;;  %v1301_v25 = vld [vmem:[%s1767_s1 + $0x60] sm:$0xff] (!%p147_p6)   ;;  %v1302_v29 = vld [vmem:[%s1767_s1 + $0x68] sm:$0xff] (!%p147_p6)  }
   0xd   : > { %1081 = vmatprep.subr.bf16.mxu0 (!%p147_p6), %v1405_v1  ;;  %1201 = vmatpush3.bf16.msra.mxu1 (!%p147_p6), %v1295_v0  ;;  %v1303_v30 = vld [vmem:[%s1767_s1 + $0x70] sm:$0xff] (!%p147_p6)   ;;  %v1304_v31 = vld [vmem:[%s1767_s1 + $0x78] sm:$0xff] (!%p147_p6)   ;;  %v1305_v32 = vld [vmem:[%s1767_s1 + $0x80] sm:$0xff] (!%p147_p6)  }
   0xe   : > { %1200 = vmatprep.subr.bf16.mxu1 (!%p147_p6), %v1405_v1  ;;  %1099 = vmatprep.mubr.msk.bf16.mxu1 (!%p147_p6), %vm1406_vm0, %v1405_v1  ;;  %v1306_v33 = vld [vmem:[%s1767_s1 + $0x88] sm:$0xff] (!%p147_p6)   ;;  %v1307_v34 = vld [vmem:[%s1767_s1 + $0x90] sm:$0xff] (!%p147_p6)   ;;  %v1308_v35 = vld [vmem:[%s1767_s1 + $0x98] sm:$0xff] (!%p147_p6)  }
   0xf   : > { %v1309_v36 = vld [vmem:[%s1767_s1 + $0xa0] sm:$0xff] (!%p147_p6)   ;;  %v1310_v37 = vld [vmem:[%s1767_s1 + $0xa8] sm:$0xff] (!%p147_p6)  }
  0x10   : > { %1082 = vmatpush3.bf16.msra.mxu0 (!%p147_p6), %v1296_v2  ;;  %v1575_v38 = vld [vmem:[%s1768_s2] ss:$0 sm:$0xff] (!%p147_p6) }
  0x11   : > { %1202 = vmatpush3.bf16.msra.mxu1 (!%p147_p6), %v1296_v2  ;;  %1155 = vmatprep.subr.bf16.mxu0 (!%p147_p6), %v1405_v1 }
  0x12   : > { %s179_s26 = scalar_select %p178_p7, %s1467_s25, 24  ;;  %1111 = vmatprep.subr.bf16.mxu1 %v1405_v1 }
  0x13   : > { %s1039_s5 = smul.u32 (%p1452_p4), 112, %s1440_s15 }
  0x14   : > { %s998_s27 = sshll.u32 %s179_s26, 3 }
  0x15   : > { %s1480_s30 = scalar_lea.vmem %s1766_s0, %s998_s27  ;;  %s170_s27 = sand.u32 1, %s1363_s12  }
  0x16   : > { %v193_v3 = vld [vmem:[%s1480_s30] sm:$0xff]  ;;  %v194_v4 = vld [vmem:[%s1480_s30 + $0x8] sm:$0xff]  ;;  %v195_v9 = vld [vmem:[%s1480_s30 + $0x10] sm:$0xff]  ;;  %s1203_s28 = smul.u32 112, %s170_s27  ;;  %s733_s12 = ssub.s32 (%p1452_p4), 25, %s1467_s25 }
  0x17   : > { %v207_v5 = vpack.c.bf16 %v194_v4, %v193_v3  ;;  %v201_v6 = vld [vmem:[%s1480_s30 + $0x40] sm:$0xff]  ;;  %v202_v7 = vld [vmem:[%s1480_s30 + $0x48] sm:$0xff]  ;;  %v196_v10 = vld [vmem:[%s1480_s30 + $0x18] sm:$0xff]  ;;  %p734_p8 = scmp.lt.s32.totalorder (%p1452_p4), %s733_s12, 14  ;;  %s1682_s8 = scalar_lea.vmem (%p1452_p4), %s1769_s3, %s1039_s5  }
  0x18   : > { %v211_v11 = vpack.c.bf16 %v202_v7, %v201_v6  ;;  %v203_v12 = vld [vmem:[%s1480_s30 + $0x50] sm:$0xff]  ;;  %v204_v13 = vld [vmem:[%s1480_s30 + $0x58] sm:$0xff]  ;;  %v208_v15 = vpack.c.bf16 %v196_v10, %v195_v9  ;;  %v197_v18 = vld [vmem:[%s1480_s30 + $0x20] sm:$0xff]  ;;  %s1645_s4 = scalar_lea.vmem [#allocation2], %s1203_s28  }
  0x19   : > { %1084 = vmatmul.mubr.msk.bf16.vlgmr.msra.gmra.mrb[0].mxu0 %vm237_vm1, %v207_v5  ;;  %v212_v16 = vpack.c.bf16 %v204_v13, %v203_v12  ;;  %v198_v19 = vld [vmem:[%s1480_s30 + $0x28] sm:$0xff]  ;;  %v205_v21 = vld [vmem:[%s1480_s30 + $0x60] sm:$0xff]  ;;  %v199_v26 = vld [vmem:[%s1480_s30 + $0x30] sm:$0xff] }
  0x1a   : > { %1087 = vmatprep.mubr.msk.bf16.mxu0 %vm1406_vm0, %v1405_v1  ;;  %1100 = vmatmul.mubr.msk.bf16.vlgmr.msra.gmra.mrb[0].mxu1 %vm237_vm1, %v211_v11  ;;  %v209_v20 = vpack.c.bf16 %v198_v19, %v197_v18  ;;  %v206_v22 = vld [vmem:[%s1480_s30 + $0x68] sm:$0xff]  ;;  %v200_v27 = vld [vmem:[%s1480_s30 + $0x38] sm:$0xff] }
  0x1b   : > { %1103 = vmatprep.mubr.msk.bf16.mxu1 %vm1406_vm0, %v1405_v1  ;;  %1112 = vmatpush3.bf16.msra.mxu1 %v1297_v8  ;;  %v213_v24 = vpack.c.bf16 %v206_v22, %v205_v21  ;;  %v210_v28 = vpack.c.bf16 %v200_v27, %v199_v26 }
  0x1c   : > { %1113 = vmatprep.subr.bf16.mxu1 %v1405_v1  ;;  %1156 = vmatpush3.bf16.msra.mxu0 %v1305_v32 }
  0x1d   : > { %1157 = vmatprep.subr.bf16.mxu0 %v1405_v1 }
  0x1f   : > { %1114 = vmatpush3.bf16.msra.mxu1 %v1298_v14 }
  0x20   : > { %1115 = vmatprep.subr.bf16.mxu1 %v1405_v1  ;;  %1158 = vmatpush3.bf16.msra.mxu0 %v1306_v33 }
  0x21   : > { %1088 = vmatmul.mubr.msk.bf16.gmra.mrb[4].mxu0 %vm237_vm1, %v208_v15  ;;  %1159 = vmatprep.subr.bf16.mxu0 %v1405_v1 }
  0x22   : > { %1091 = vmatprep.mubr.msk.bf16.mxu0 %vm1406_vm0, %v1405_v1  ;;  %1104 = vmatmul.mubr.msk.bf16.gmra.mrb[4].mxu1 %vm237_vm1, %v212_v16 }
  0x23   : > { %1107 = vmatprep.mubr.msk.bf16.mxu1 %vm1406_vm0, %v1405_v1  ;;  %1116 = vmatpush3.bf16.msra.mxu1 %v1299_v17 }
  0x24   : > { %1117 = vmatprep.subr.bf16.mxu1 %v1405_v1  ;;  %1160 = vmatpush3.bf16.msra.mxu0 %v1307_v34 }
  0x25   : > { %1161 = vmatprep.subr.bf16.mxu0 %v1405_v1 }
  0x27   : > { %1118 = vmatpush3.bf16.msra.mxu1 %v1300_v23 }
  0x28   : > { %1119 = vmatprep.subr.bf16.mxu1 %v1405_v1  ;;  %1162 = vmatpush3.bf16.msra.mxu0 %v1308_v35 }
  0x29   : > { %1092 = vmatmul.mubr.msk.bf16.gmra.mrb[8].mxu0 %vm237_vm1, %v209_v20  ;;  %1163 = vmatprep.subr.bf16.mxu0 %v1405_v1 }
  0x2a   : > { %1095 = vmatprep.mubr.msk.bf16.mxu0 %vm1406_vm0, %v1405_v1  ;;  %1108 = vmatmul.mubr.msk.bf16.gmra.mrb[8].mxu1 %vm237_vm1, %v213_v24 }
  0x2b   : > { %1120 = vmatpush3.bf16.msra.mxu1 %v1301_v25  ;;  %1127 = vmatprep.mubr.msk.bf16.mxu1 %vm1406_vm0, %v1405_v1 }
  0x2c   : > { %1121 = vmatprep.subr.bf16.mxu1 %v1405_v1  ;;  %1164 = vmatpush3.bf16.msra.mxu0 %v1309_v36 }
  0x2d   : > { %1165 = vmatprep.subr.bf16.mxu0 %v1405_v1 }
  0x2f   : > { %1122 = vmatpush3.bf16.msra.mxu1 %v1302_v29 }
  0x30   : > { %1123 = vmatprep.subr.bf16.mxu1 %v1405_v1  ;;  %1166 = vmatpush3.bf16.msra.mxu0 %v1310_v37 }
  0x31   : > { %1096 = vmatmul.mubr.msk.bf16.gmra.mrb[12].mxu0 %vm237_vm1, %v210_v28  ;;  %1167 = vmatprep.subr.bf16.mxu0 %v1405_v1 }
  0x32   : > { %1171 = vmatprep.mubr.msk.bf16.mxu0 %vm1406_vm0, %v1405_v1 }
  0x33   : > { %1124 = vmatpush3.bf16.msra.mxu1 %v1303_v30 }
  0x34   : > { %1125 = vmatprep.subr.bf16.mxu1 %v1405_v1 }
  0x37   : > { %1126 = vmatpush3.bf16.msra.mxu1 %v1304_v31 }
  0xec   : > { %v293_v39 = vpop.f32.mrb[0].mxu0 }
  0xed   : > { %v294_v40 = vadd.f32 %v1575_v38, %v293_v39  ;;  %v1085_v41 = vpop.f32.mrb[1].mxu0  ;;  %v325_v45 = vpop.f32.mrb[0].mxu1 }
  0xee   : > { %v296_v42 = vpop.f32.mrb[2].mxu0  ;;  %v326_v46 = vadd.f32 %v1575_v38, %v325_v45  ;;  %v1101_v47 = vpop.f32.mrb[1].mxu1  ;;  %v1613_v41 = vld [vmem:[%s1768_s2 + $0x1] ss:$0 sm:$0xff] }
  0xef   : > { %v297_v43 = vadd.f32 %v1575_v38, %v296_v42  ;;  %v1086_v44 = vpop.f32.mrb[3].mxu0  ;;  %v348_v48 = vmax.f32 %v294_v40, 0.0  ;;  %v328_v50 = vpop.f32.mrb[2].mxu1  ;;  %v1312_v40 = vld [vmem:[%s1767_s1 + $0xb8] sm:$0xff]  }
  0xf0   : > { %v356_v51 = vmax.f32 %v326_v46, 0.0  ;;  %v329_v52 = vadd.f32 %v1575_v38, %v328_v50  ;;  %v1102_v53 = vpop.f32.mrb[3].mxu1 }
  0xf1   : > { %v349_v49 = vmax.f32 %v297_v43, 0.0 }
  0xf2   : > { %v357_v56 = vmax.f32 %v329_v52, 0.0 }
  0xf3   : > { %v362_v54 = vpack.c.bf16 %v349_v49, %v348_v48 }
  0xf4   : > { %v301_v55 = vpop.f32.mrb[4].mxu0  ;;  %v366_v60 = vpack.c.bf16 %v357_v56, %v356_v51 }
  0xf5   : > { %v302_v57 = vadd.f32 %v1575_v38, %v301_v55  ;;  %v1089_v58 = vpop.f32.mrb[5].mxu0  ;;  %1128 = vmatmul.mubr.bf16.vlgmr.msra.gmra.mrb[12].mxu1 %v362_v54  ;;  %v333_v63 = vpop.f32.mrb[4].mxu1 }
  0xf6   : > { %v304_v59 = vpop.f32.mrb[6].mxu0  ;;  %1131 = vmatprep.mubr.msk.bf16.mxu1 %vm1406_vm0, %v1405_v1  ;;  %v334_v0 = vadd.f32 %v1575_v38, %v333_v63  ;;  %v1105_v2 = vpop.f32.mrb[5].mxu1 }
  0xf7   : > { %v305_v61 = vadd.f32 %v1575_v38, %v304_v59  ;;  %v1090_v62 = vpop.f32.mrb[7].mxu0  ;;  %v350_v3 = vmax.f32 %v302_v57, 0.0  ;;  %v336_v5 = vpop.f32.mrb[6].mxu1 }
  0xf8   : > { %v358_v6 = vmax.f32 %v334_v0, 0.0  ;;  %v337_v7 = vadd.f32 %v1575_v38, %v336_v5  ;;  %v1106_v8 = vpop.f32.mrb[7].mxu1 }
  0xf9   : > { %v351_v4 = vmax.f32 %v305_v61, 0.0 }
  0xfa   : > { %v359_v11 = vmax.f32 %v337_v7, 0.0 }
  0xfb   : > { %v363_v9 = vpack.c.bf16 %v351_v4, %v350_v3 }
  0xfc   : > { %v309_v10 = vpop.f32.mrb[8].mxu0  ;;  %v367_v15 = vpack.c.bf16 %v359_v11, %v358_v6 }
  0xfd   : > { %v310_v12 = vadd.f32 %v1575_v38, %v309_v10  ;;  %v1093_v13 = vpop.f32.mrb[9].mxu0  ;;  %1132 = vmatmul.mubr.bf16.gmra.mrb[16].mxu1 %v363_v9  ;;  %v341_v18 = vpop.f32.mrb[8].mxu1 }
  0xfe   : > { %v312_v14 = vpop.f32.mrb[10].mxu0  ;;  %1135 = vmatprep.mubr.msk.bf16.mxu1 %vm1406_vm0, %v1405_v1  ;;  %v342_v19 = vadd.f32 %v1575_v38, %v341_v18  ;;  %v1109_v20 = vpop.f32.mrb[9].mxu1 }
  0xff   : > { %v313_v16 = vadd.f32 %v1575_v38, %v312_v14  ;;  %v1094_v17 = vpop.f32.mrb[11].mxu0  ;;  %v352_v21 = vmax.f32 %v310_v12, 0.0  ;;  %v344_v23 = vpop.f32.mrb[10].mxu1 }
 0x100   : > { %v360_v24 = vmax.f32 %v342_v19, 0.0  ;;  %v345_v25 = vadd.f32 %v1575_v38, %v344_v23  ;;  %v1110_v26 = vpop.f32.mrb[11].mxu1 }
 0x101   : > { %v353_v22 = vmax.f32 %v313_v16, 0.0 }
 0x102   : > { %v361_v29 = vmax.f32 %v345_v25, 0.0 }
 0x103   : > { %v364_v27 = vpack.c.bf16 %v353_v22, %v352_v21 }
 0x104   : > { %v317_v28 = vpop.f32.mrb[12].mxu0  ;;  %v368_v33 = vpack.c.bf16 %v361_v29, %v360_v24 }
 0x105   : > { %v318_v30 = vadd.f32 %v1575_v38, %v317_v28  ;;  %v1097_v31 = vpop.f32.mrb[13].mxu0  ;;  %1136 = vmatmul.mubr.bf16.gmra.mrb[20].mxu1 %v364_v27 }
 0x106   : > { %v320_v32 = vpop.f32.mrb[14].mxu0  ;;  %1139 = vmatprep.mubr.msk.bf16.mxu1 %vm1406_vm0, %v1405_v1 }
 0x107   : > { %v321_v34 = vadd.f32 %v1575_v38, %v320_v32  ;;  %v1098_v35 = vpop.f32.mrb[15].mxu0  ;;  %v354_v36 = vmax.f32 %v318_v30, 0.0  ;;  %v1311_v38 = vld [vmem:[%s1767_s1 + $0xb0] sm:$0xff]  }
 0x108   : > { %1168 = vmatpush3.bf16.msra.mxu0 %v1311_v38 }
 0x109   : > { %v355_v37 = vmax.f32 %v321_v34, 0.0  ;;  %1169 = vmatprep.subr.bf16.mxu0 %v1405_v1 }
 0x10b   : > { %v365_v39 = vpack.c.bf16 %v355_v37, %v354_v36 }
 0x10c   : > { %1170 = vmatpush3.bf16.msra.mxu0 %v1312_v40 }
 0x10d   : > { %1140 = vmatmul.mubr.bf16.gmra.mrb[24].mxu1 %v365_v39 }
 0x10e   : > { %1143 = vmatprep.mubr.msk.bf16.mxu1 %vm1406_vm0, %v1405_v1 }
 0x115   : > { %1144 = vmatmul.mubr.bf16.gmra.mrb[28].mxu1 %v366_v60 }
 0x116   : > { %1147 = vmatprep.mubr.msk.bf16.mxu1 %vm1406_vm0, %v1405_v1 }
 0x11d   : > { %1148 = vmatmul.mubr.bf16.gmra.mrb[32].mxu1 %v367_v15 }
 0x11e   : > { %1151 = vmatprep.mubr.msk.bf16.mxu1 %vm1406_vm0, %v1405_v1 }
 0x125   : > { %1152 = vmatmul.mubr.bf16.gmra.mrb[36].mxu1 %v368_v33 }
 0x1c8   : > { %v474_v42 = vpop.f32.mrb[12].mxu1 }
 0x1c9   : > { %v475_v43 = vadd.f32 %v1613_v41, %v474_v42  ;;  %v1129_v44 = vpop.f32.mrb[13].mxu1 }
 0x1ca   : > { %v477_v45 = vpop.f32.mrb[14].mxu1 }
 0x1cb   : > { %v478_v46 = vadd.f32 %v1613_v41, %v477_v45  ;;  %v1130_v47 = vpop.f32.mrb[15].mxu1  ;;  %v529_v48 = vmax.f32 %v475_v43, 0.0  ;;  %v1018_v43 = vld [vmem:[%s1768_s2 + $0x2] ss:$0 sm:$0xff] }
 0x1cd   : > { %v530_v49 = vmax.f32 %v478_v46, 0.0 }
 0x1cf   : > { %v543_v50 = vpack.c.bf16 %v530_v49, %v529_v48 }
 0x1d0   : > { %v482_v51 = vpop.f32.mrb[16].mxu1 }
 0x1d1   : > { %v483_v52 = vadd.f32 %v1613_v41, %v482_v51  ;;  %v1133_v53 = vpop.f32.mrb[17].mxu1  ;;  %1172 = vmatmul.mubr.bf16.vlgmr.msra.gmra.mrb[16].mxu0 %v543_v50 }
 0x1d2   : > { %v485_v54 = vpop.f32.mrb[18].mxu1  ;;  %1175 = vmatprep.mubr.msk.bf16.mxu0 %vm1406_vm0, %v1405_v1 }
 0x1d3   : > { %v486_v55 = vadd.f32 %v1613_v41, %v485_v54  ;;  %v1134_v56 = vpop.f32.mrb[19].mxu1  ;;  %v531_v57 = vmax.f32 %v483_v52, 0.0 }
 0x1d5   : > { %v532_v58 = vmax.f32 %v486_v55, 0.0 }
 0x1d7   : > { %v544_v59 = vpack.c.bf16 %v532_v58, %v531_v57 }
 0x1d8   : > { %v490_v60 = vpop.f32.mrb[20].mxu1 }
 0x1d9   : > { %v491_v61 = vadd.f32 %v1613_v41, %v490_v60  ;;  %v1137_v62 = vpop.f32.mrb[21].mxu1  ;;  %1176 = vmatmul.mubr.bf16.gmra.mrb[20].mxu0 %v544_v59 }
 0x1da   : > { %v493_v63 = vpop.f32.mrb[22].mxu1  ;;  %1179 = vmatprep.mubr.msk.bf16.mxu0 %vm1406_vm0, %v1405_v1 }
 0x1db   : > { %v494_v0 = vadd.f32 %v1613_v41, %v493_v63  ;;  %v1138_v2 = vpop.f32.mrb[23].mxu1  ;;  %v533_v3 = vmax.f32 %v491_v61, 0.0 }
 0x1dd   : > { %v534_v4 = vmax.f32 %v494_v0, 0.0 }
 0x1df   : > { %v545_v5 = vpack.c.bf16 %v534_v4, %v533_v3 }
 0x1e0   : > { %v498_v6 = vpop.f32.mrb[24].mxu1 }
 0x1e1   : > { %v499_v7 = vadd.f32 %v1613_v41, %v498_v6  ;;  %v1141_v8 = vpop.f32.mrb[25].mxu1  ;;  %1180 = vmatmul.mubr.bf16.gmra.mrb[24].mxu0 %v545_v5 }
 0x1e2   : > { %v501_v9 = vpop.f32.mrb[26].mxu1  ;;  %1183 = vmatprep.mubr.msk.bf16.mxu0 %vm1406_vm0, %v1405_v1 }
 0x1e3   : > { %v502_v10 = vadd.f32 %v1613_v41, %v501_v9  ;;  %v1142_v11 = vpop.f32.mrb[27].mxu1  ;;  %v535_v12 = vmax.f32 %v499_v7, 0.0 }
 0x1e5   : > { %v536_v13 = vmax.f32 %v502_v10, 0.0 }
 0x1e7   : > { %v546_v14 = vpack.c.bf16 %v536_v13, %v535_v12 }
 0x1e8   : > { %v506_v15 = vpop.f32.mrb[28].mxu1 }
 0x1e9   : > { %v507_v16 = vadd.f32 %v1613_v41, %v506_v15  ;;  %v1145_v17 = vpop.f32.mrb[29].mxu1  ;;  %1184 = vmatmul.mubr.bf16.gmra.mrb[28].mxu0 %v546_v14 }
 0x1ea   : > { %v509_v18 = vpop.f32.mrb[30].mxu1  ;;  %1187 = vmatprep.mubr.msk.bf16.mxu0 %vm1406_vm0, %v1405_v1 }
 0x1eb   : > { %v510_v19 = vadd.f32 %v1613_v41, %v509_v18  ;;  %v1146_v20 = vpop.f32.mrb[31].mxu1  ;;  %v537_v21 = vmax.f32 %v507_v16, 0.0 }
 0x1ed   : > { %v538_v22 = vmax.f32 %v510_v19, 0.0 }
 0x1ef   : > { %v547_v23 = vpack.c.bf16 %v538_v22, %v537_v21 }
 0x1f0   : > { %v514_v24 = vpop.f32.mrb[32].mxu1 }
 0x1f1   : > { %v515_v25 = vadd.f32 %v1613_v41, %v514_v24  ;;  %v1149_v26 = vpop.f32.mrb[33].mxu1  ;;  %1188 = vmatmul.mubr.bf16.gmra.mrb[32].mxu0 %v547_v23 }
 0x1f2   : > { %v517_v27 = vpop.f32.mrb[34].mxu1  ;;  %1191 = vmatprep.mubr.msk.bf16.mxu0 %vm1406_vm0, %v1405_v1 }
 0x1f3   : > { %v518_v28 = vadd.f32 %v1613_v41, %v517_v27  ;;  %v1150_v29 = vpop.f32.mrb[35].mxu1  ;;  %v539_v30 = vmax.f32 %v515_v25, 0.0 }
 0x1f5   : > { %v540_v31 = vmax.f32 %v518_v28, 0.0 }
 0x1f7   : > { %v548_v32 = vpack.c.bf16 %v540_v31, %v539_v30 }
 0x1f8   : > { %v522_v33 = vpop.f32.mrb[36].mxu1 }
 0x1f9   : > { %v523_v34 = vadd.f32 %v1613_v41, %v522_v33  ;;  %v1153_v35 = vpop.f32.mrb[37].mxu1  ;;  %1192 = vmatmul.mubr.bf16.gmra.mrb[36].mxu0 %v548_v32 }
 0x1fa   : > { %v525_v36 = vpop.f32.mrb[38].mxu1  ;;  %1195 = vmatprep.mubr.msk.bf16.mxu0 %vm1406_vm0, %v1405_v1 }
 0x1fb   : > { %v526_v37 = vadd.f32 %v1613_v41, %v525_v36  ;;  %v1154_v39 = vpop.f32.mrb[39].mxu1  ;;  %v541_v38 = vmax.f32 %v523_v34, 0.0 }
 0x1fd   : > { %v542_v40 = vmax.f32 %v526_v37, 0.0 }
 0x1ff   : > { %v549_v42 = vpack.c.bf16 %v542_v40, %v541_v38 }
 0x201   : > { %1196 = vmatmul.mubr.bf16.gmra.mrb[40].mxu0 %v549_v42 }
 0x2a4   : > { %v655_v44 = vpop.f32.mrb[16].mxu0 }
 0x2a5   : > { %v656_v45 = vadd.f32 %v1018_v43, %v655_v44  ;;  %v1173_v46 = vpop.f32.mrb[17].mxu0 }
 0x2a6   : > { %v658_v47 = vpop.f32.mrb[18].mxu0 }
 0x2a7   : > { %711 = vst.msk [vmem:[%s1645_s4] sm:$0xff] %vm710_vm2, %v656_v45  ;;  %v659_v1 = vadd.f32 %v1018_v43, %v658_v47  ;;  %v1174_v41 = vpop.f32.mrb[19].mxu0 }
 0x2a9   : > { %712 = vst.msk [vmem:[%s1645_s4 + $0x8] sm:$0xff] %vm710_vm2, %v659_v1 }
 0x2ac   : > { %v663_v48 = vpop.f32.mrb[20].mxu0 }
 0x2ad   : > { %v664_v49 = vadd.f32 %v1018_v43, %v663_v48  ;;  %v1177_v50 = vpop.f32.mrb[21].mxu0 }
 0x2ae   : > { %v666_v51 = vpop.f32.mrb[22].mxu0 }
 0x2af   : > { %713 = vst.msk [vmem:[%s1645_s4 + $0x10] sm:$0xff] %vm710_vm2, %v664_v49  ;;  %v667_v52 = vadd.f32 %v1018_v43, %v666_v51  ;;  %v1178_v53 = vpop.f32.mrb[23].mxu0 }
 0x2b1   : > { %714 = vst.msk [vmem:[%s1645_s4 + $0x18] sm:$0xff] %vm710_vm2, %v667_v52 }
 0x2b4   : > { %v671_v54 = vpop.f32.mrb[24].mxu0 }
 0x2b5   : > { %v672_v55 = vadd.f32 %v1018_v43, %v671_v54  ;;  %v1181_v56 = vpop.f32.mrb[25].mxu0 }
 0x2b6   : > { %v674_v57 = vpop.f32.mrb[26].mxu0 }
 0x2b7   : > { %715 = vst.msk [vmem:[%s1645_s4 + $0x20] sm:$0xff] %vm710_vm2, %v672_v55  ;;  %v675_v58 = vadd.f32 %v1018_v43, %v674_v57  ;;  %v1182_v59 = vpop.f32.mrb[27].mxu0 }
 0x2b9   : > { %716 = vst.msk [vmem:[%s1645_s4 + $0x28] sm:$0xff] %vm710_vm2, %v675_v58 }
 0x2bc   : > { %v679_v60 = vpop.f32.mrb[28].mxu0 }
 0x2bd   : > { %v680_v61 = vadd.f32 %v1018_v43, %v679_v60  ;;  %v1185_v62 = vpop.f32.mrb[29].mxu0 }
 0x2be   : > { %v682_v63 = vpop.f32.mrb[30].mxu0 }
 0x2bf   : > { %717 = vst.msk [vmem:[%s1645_s4 + $0x30] sm:$0xff] %vm710_vm2, %v680_v61  ;;  %v683_v0 = vadd.f32 %v1018_v43, %v682_v63  ;;  %v1186_v2 = vpop.f32.mrb[31].mxu0 }
 0x2c1   : > { %718 = vst.msk [vmem:[%s1645_s4 + $0x38] sm:$0xff] %vm710_vm2, %v683_v0 }
 0x2c4   : > { %v687_v3 = vpop.f32.mrb[32].mxu0 }
 0x2c5   : > { %v688_v4 = vadd.f32 %v1018_v43, %v687_v3  ;;  %v1189_v5 = vpop.f32.mrb[33].mxu0 }
 0x2c6   : > { %v690_v6 = vpop.f32.mrb[34].mxu0 }
 0x2c7   : > { %719 = vst.msk [vmem:[%s1645_s4 + $0x40] sm:$0xff] %vm710_vm2, %v688_v4  ;;  %v691_v7 = vadd.f32 %v1018_v43, %v690_v6  ;;  %v1190_v8 = vpop.f32.mrb[35].mxu0 }
 0x2c9   : > { %720 = vst.msk [vmem:[%s1645_s4 + $0x48] sm:$0xff] %vm710_vm2, %v691_v7 }
 0x2cc   : > { %v695_v9 = vpop.f32.mrb[36].mxu0 }
 0x2cd   : > { %v696_v10 = vadd.f32 %v1018_v43, %v695_v9  ;;  %v1193_v11 = vpop.f32.mrb[37].mxu0 }
 0x2ce   : > { %v698_v12 = vpop.f32.mrb[38].mxu0 }
 0x2cf   : > { %721 = vst.msk [vmem:[%s1645_s4 + $0x50] sm:$0xff] %vm710_vm2, %v696_v10  ;;  %v699_v13 = vadd.f32 %v1018_v43, %v698_v12  ;;  %v1194_v14 = vpop.f32.mrb[39].mxu0 }
 0x2d1   : > { %722 = vst.msk [vmem:[%s1645_s4 + $0x58] sm:$0xff] %vm710_vm2, %v699_v13 }
 0x2d3   : > { %731 = sbr.rel (!%p1452_p4) target bundleno = 791 (0x317), region = 36 }
 0x2d4   : > { %v703_v15 = vpop.f32.mrb[40].mxu0 }
 0x2d5   : > { %v704_v16 = vadd.f32 %v1018_v43, %v703_v15  ;;  %v1197_v17 = vpop.f32.mrb[41].mxu0 }
 0x2d6   : > { %v706_v18 = vpop.f32.mrb[42].mxu0 }
 0x2d7   : > { %723 = vst.msk [vmem:[%s1645_s4 + $0x60] sm:$0xff] %vm710_vm2, %v704_v16  ;;  %v707_v19 = vadd.f32 %v1018_v43, %v706_v18  ;;  %v1198_v20 = vpop.f32.mrb[43].mxu0 }
 0x2d9   : > { %724 = vst.msk [vmem:[%s1645_s4 + $0x68] sm:$0xff] %vm710_vm2, %v707_v19 }
 0x2da   : > { %s1778_s12 = smov (!%p734_p8, %s733_s12), 14 }
 0x2db   : > { %s1027_s9 = sshll.u32 %s1778_s12, 7 }
 0x2dc   : > { %p1030_p9 = scmp.eq.s32.totalorder %s1027_s9, 0 }
 0x2dd   : > { %1313 = sdivrem.u32 (!%p1030_p9), %s1778_s12, 14 }
 0x2de   : > { %742 = sbr.rel (%p1030_p9) target bundleno = 791 (0x317), region = 40 }
 0x2e6   : > { %s1688_s20 = spop.drf %1313 }
 0x2e7   : > { %p1031_p10 = scmp.le.s32.totalorder %s1688_s20, 0 }
 0x2e8   : > { %s1771_s15 = smov (!%p1031_p10), %s1682_s8  ;;  %s1772_s25 = smov (!%p1031_p10), %s1645_s4 }
 0x2e9   : > { %950 = sbr.rel (%p1031_p10) target bundleno = 762 (0x2fa), region = 116  ;;  %s1697_s10 = smov (!%p1031_p10), 0  }
 0x2ea   : > { %s1699_s11 = smov (!%p1031_p10), 0  }
 0x2f0 LB: >> { %v832_v21 = vld [vmem:[%s1379_s25] sm:$0xff]  ;;  %v834_v22 = vld [vmem:[%s1379_s25 + $0x8] sm:$0xff]  ;;  %v836_v23 = vld [vmem:[%s1379_s25 + $0x10] sm:$0xff]  ;;  %s860_s14 = sadd.s32 1, %s1383_s10  ;;  %s826_s11 = sadd.s32 1, %s1387_s11   ;;  %s1387_s11 = sphi %s1699_s11, %s826_s11   ;;  %s1383_s10 = sphi %s1697_s10, %s1773_s10   ;;  %s1379_s25 = sphi %s1772_s25, %s865_s25   ;;  %s1375_s15 = sphi %s1771_s15, %s866_s15  }
 0x2f1   : >> { %833 = vst [vmem:[%s1375_s15] sm:$0xff] %v832_v21  ;;  %835 = vst [vmem:[%s1375_s15 + $0x8] sm:$0xff] %v834_v22  ;;  %v838_v24 = vld [vmem:[%s1379_s25 + $0x18] sm:$0xff]  ;;  %v840_v25 = vld [vmem:[%s1379_s25 + $0x20] sm:$0xff]  ;;  %p861_p11 = scmp.ge.s32.totalorder %s860_s14, %s1688_s20  ;;  %p825_p12 = scmp.ge.s32.totalorder %s826_s11, %s1688_s20 }
 0x2f2   : >> { %837 = vst [vmem:[%s1375_s15 + $0x10] sm:$0xff] %v836_v23  ;;  %v842_v26 = vld [vmem:[%s1379_s25 + $0x28] sm:$0xff]  ;;  %839 = vst [vmem:[%s1375_s15 + $0x18] sm:$0xff] %v838_v24  ;;  %v844_v27 = vld [vmem:[%s1379_s25 + $0x30] sm:$0xff] }
 0x2f3   : >> { %841 = vst [vmem:[%s1375_s15 + $0x20] sm:$0xff] %v840_v25  ;;  %843 = vst [vmem:[%s1375_s15 + $0x28] sm:$0xff] %v842_v26  ;;  %v846_v28 = vld [vmem:[%s1379_s25 + $0x38] sm:$0xff]  ;;  %v848_v29 = vld [vmem:[%s1379_s25 + $0x40] sm:$0xff]  ;;  %s1780_s14 = smov (%p861_p11, %s860_s14), 0  ;;  %828 = sbr.rel (!%p825_p12) target bundleno = 752 (0x2f0), region = 122 }
 0x2f4   : >> { %845 = vst [vmem:[%s1375_s15 + $0x30] sm:$0xff] %v844_v27  ;;  %847 = vst [vmem:[%s1375_s15 + $0x38] sm:$0xff] %v846_v28  ;;  %v850_v30 = vld [vmem:[%s1379_s25 + $0x48] sm:$0xff]  ;;  %v852_v31 = vld [vmem:[%s1379_s25 + $0x50] sm:$0xff]  ;;  %s863_s17 = smul.u32 112, %s1780_s14  ;;  %s1773_s10 = smov %s1780_s14 }
 0x2f5   : >> { %849 = vst [vmem:[%s1375_s15 + $0x40] sm:$0xff] %v848_v29  ;;  %v854_v32 = vld [vmem:[%s1379_s25 + $0x58] sm:$0xff]  ;;  %851 = vst [vmem:[%s1375_s15 + $0x48] sm:$0xff] %v850_v30  ;;  %v856_v33 = vld [vmem:[%s1379_s25 + $0x60] sm:$0xff] }
 0x2f6   : >> { %853 = vst [vmem:[%s1375_s15 + $0x50] sm:$0xff] %v852_v31  ;;  %855 = vst [vmem:[%s1375_s15 + $0x58] sm:$0xff] %v854_v32  ;;  %v858_v34 = vld [vmem:[%s1379_s25 + $0x68] sm:$0xff]  ;;  %s865_s25 = scalar_lea.vmem %s1645_s4, %s863_s17 [#allocation2]  }
 0x2f7   : >> { %857 = vst [vmem:[%s1375_s15 + $0x60] sm:$0xff] %v856_v33  ;;  %859 = vst [vmem:[%s1375_s15 + $0x68] sm:$0xff] %v858_v34  ;;  %s866_s15 = scalar_lea.vmem %s1682_s8, %s863_s17  }
 0x2fa PF: > { %1315 = sdivrem.u32 %s1778_s12, 14 }
 0x2fb   : > { %s1032_s18 = smul.u32 112, %s1688_s20 }
 0x2fd   : > { %s871_s21 = scalar_lea.vmem %s1645_s4, %s1032_s18 [#allocation2]   ;;  %s873_s22 = scalar_lea.vmem %s1682_s8, %s1032_s18  }
 0x303   : > { %s1316_s23 = spop.drf %1315 }
 0x304   : > { %p1034_p13 = scmp.le.s32.totalorder %s1316_s23, 0 }
 0x305   : > { %s1389_s24 = smov (!%p1034_p13), %s873_s22   ;;  %s1393_s26 = smov (!%p1034_p13), %s871_s21  }
 0x306   : > { %964 = sbr.rel (%p1034_p13) target bundleno = 791 (0x317), region = 127  ;;  %s1397_s27 = smov (!%p1034_p13), 0  }
 0x307   : > { %s1401_s28 = smov (!%p1034_p13), 0  }
 0x30d LB: >> { %v883_v35 = vld [vmem:[%s1395_s26] sm:$0xff]  ;;  %s885_s29 = sadd.s32 1, %s1399_s27  ;;  %s877_s28 = sadd.s32 1, %s1403_s28   ;;  %s1403_s28 = sphi %s1401_s28, %s877_s28   ;;  %s1399_s27 = sphi %s1397_s27, %s1398_s27   ;;  %s1395_s26 = sphi %s1393_s26, %s890_s26   ;;  %s1391_s24 = sphi %s1389_s24, %s891_s24  }
 0x30e   : >> { %884 = vst [vmem:[%s1391_s24] sm:$0xff] %v883_v35  ;;  %p886_p0 = scmp.ge.s32.totalorder %s885_s29, %s1316_s23  ;;  %p876_p1 = scmp.ge.s32.totalorder %s877_s28, %s1316_s23 }
 0x310   : >> { %s1782_s29 = smov (%p886_p0, %s885_s29), 0  ;;  %879 = sbr.rel (!%p876_p1) target bundleno = 781 (0x30d), region = 133 }
 0x311   : >> { %s1035_s30 = sshll.u32 %s1782_s29, 3  ;;  %s1398_s27 = smov %s1782_s29  }
 0x312   : >> { %s890_s26 = scalar_lea.vmem %s871_s21, %s1035_s30 [#allocation2]   ;;  %s891_s24 = scalar_lea.vmem %s873_s22, %s1035_s30  }
 0x317 PF: > { %p10_p2 = scmp.ge.s32.totalorder %s1442_s16, 4   ;;  %s1774_s12 = smov %s1367_s13 }
 0x318   : > { %s1775_s13 = smov %s1450_s19  ;;  %s1776_s14 = smov %s1442_s16 }
 0x319   :  { %12 = sbr.rel (!%p10_p2) target bundleno = 2 (0x2), region = 144 }

</bundles_post_ra>
